<compile_context>
chip_gen: v7x
topology: tpu7x:2x2x1
jax: 0.10.0
libtpu: 0.0.40
codegen_flags: <defaults>
</compile_context>

<pallas_src>
import math
import numpy as np
import jax
import jax.numpy as jnp
from jax.experimental import pallas as pl
from jax.experimental.pallas import tpu as pltpu

TM = 256  # row tile for the 1-D row grids (review: >=256; capped to the row count)


def _round_up(x, m):
    return (x + m - 1) // m * m


def _row_grid(M, tm=TM):
    bm = min(tm, _round_up(M, 8))
    return bm, pl.cdiv(M, bm)


_PAR = pltpu.CompilerParams(dimension_semantics=("parallel",))


# ----------------------------- Pallas kernels -----------------------------

def _ln_kernel(x_ref, w_ref, o_ref):
    # LayerNorm without bias, eps = 1e-6
    x = x_ref[...].astype(jnp.float32)
    mean = jnp.mean(x, axis=-1, keepdims=True)
    var = jnp.mean((x - mean) ** 2, axis=-1, keepdims=True)
    y = (x - mean) * jax.lax.rsqrt(var + 1e-6)
    o_ref[...] = (y * w_ref[...]).astype(o_ref.dtype)


def _linear_kernel(x_ref, w_ref, b_ref, o_ref):
    acc = jnp.dot(x_ref[...], w_ref[...], preferred_element_type=jnp.float32)
    o_ref[...] = (acc + b_ref[...]).astype(o_ref.dtype)


def _make_attn_in_kernel(n_heads, lp, off_dim):
    # fused: LN(x) -> value proj ; (LN(x)+pos) -> [offset | attn-weight] proj
    #        + per-head softmax of the attention weights.
    # single lane-dense output: [value | offsets | softmax(attn_w)]  (width 128 here)
    def kern(x_ref, p_ref, nw_ref, wv_ref, bv_ref, woa_ref, boa_ref, o_ref):
        x = x_ref[...].astype(jnp.float32)
        mean = jnp.mean(x, axis=-1, keepdims=True)
        var = jnp.mean((x - mean) ** 2, axis=-1, keepdims=True)
        xn = (x - mean) * jax.lax.rsqrt(var + 1e-6) * nw_ref[...]
        q = xn + p_ref[...].astype(jnp.float32)
        val = jnp.dot(xn, wv_ref[...], preferred_element_type=jnp.float32) + bv_ref[...]
        oa = jnp.dot(q, woa_ref[...], preferred_element_type=jnp.float32) + boa_ref[...]
        off = oa[:, :off_dim]
        logits = oa[:, off_dim:]
        parts = []
        for h in range(n_heads):                      # grouped softmax (levels*points per head)
            g = logits[:, h * lp:(h + 1) * lp]
            g = g - jnp.max(g, axis=-1, keepdims=True)
            e = jnp.exp(g)
            parts.append(e / jnp.sum(e, axis=-1, keepdims=True))
        aw = jnp.concatenate(parts, axis=-1)
        o_ref[...] = jnp.concatenate([val, off, aw], axis=-1).astype(o_ref.dtype)
    return kern


def _add_mlp_kernel(a_ref, b_ref, nw_ref, w1_ref, w2_ref, sb_ref, o_ref):
    # fused: x = a + b ; out = x + fc2(StarReLU(fc1(LayerNormNoBias(x))))
    x = a_ref[...].astype(jnp.float32) + b_ref[...].astype(jnp.float32)
    mean = jnp.mean(x, axis=-1, keepdims=True)
    var = jnp.mean((x - mean) ** 2, axis=-1, keepdims=True)
    y = (x - mean) * jax.lax.rsqrt(var + 1e-6) * nw_ref[...]
    h = jnp.dot(y, w1_ref[...], preferred_element_type=jnp.float32)
    r = jnp.maximum(h, 0.0)
    h = sb_ref[0] * r * r + sb_ref[1]                 # StarReLU: s * relu(x)^2 + b
    out = jnp.dot(h, w2_ref[...], preferred_element_type=jnp.float32)
    o_ref[...] = (x + out).astype(o_ref.dtype)


# ----------------------------- Pallas wrappers -----------------------------

def layer_norm_nb(x2d, weight):
    M, C = x2d.shape
    bm, g = _row_grid(M)
    return pl.pallas_call(
        _ln_kernel,
        out_shape=jax.ShapeDtypeStruct((M, C), x2d.dtype),
        grid=(g,),
        in_specs=[pl.BlockSpec((bm, C), lambda i: (i, 0)),
                  pl.BlockSpec((1, C), lambda i: (0, 0))],
        out_specs=pl.BlockSpec((bm, C), lambda i: (i, 0)),
        compiler_params=_PAR,
    )(x2d, weight.reshape(1, C))


def linear_pallas(x2d, w, b=None):
    M, K = x2d.shape
    N = w.shape[1]
    if b is None:
        b = jnp.zeros((N,), x2d.dtype)
    bm, g = _row_grid(M)
    return pl.pallas_call(
        _linear_kernel,
        out_shape=jax.ShapeDtypeStruct((M, N), x2d.dtype),
        grid=(g,),
        in_specs=[pl.BlockSpec((bm, K), lambda i: (i, 0)),
                  pl.BlockSpec((K, N), lambda i: (0, 0)),
                  pl.BlockSpec((1, N), lambda i: (0, 0))],
        out_specs=pl.BlockSpec((bm, N), lambda i: (i, 0)),
        compiler_params=_PAR,
    )(x2d, w, b.reshape(1, N))


def attn_input_proj(src2d, pos2d, norm_w, val_w, val_b, off_w, off_b, aw_w, aw_b,
                    n_heads, n_levels, n_points):
    # One fused kernel: LN + value/offset/attn-weight projections + softmax.
    M, C = src2d.shape
    off_dim = off_w.shape[1]
    aw_dim = aw_w.shape[1]
    lp = n_levels * n_points
    woa = jnp.concatenate([off_w, aw_w], axis=1)                    # (C, off+aw)
    boa = jnp.concatenate([off_b, aw_b]).reshape(1, off_dim + aw_dim)
    Nout = C + off_dim + aw_dim                                     # 32+64+32 = 128 (lane-dense)
    bm, g = _row_grid(M)
    out = pl.pallas_call(
        _make_attn_in_kernel(n_heads, lp, off_dim),
        out_shape=jax.ShapeDtypeStruct((M, Nout), src2d.dtype),
        grid=(g,),
        in_specs=[pl.BlockSpec((bm, C), lambda i: (i, 0)),
                  pl.BlockSpec((bm, C), lambda i: (i, 0)),
                  pl.BlockSpec((1, C), lambda i: (0, 0)),
                  pl.BlockSpec((C, C), lambda i: (0, 0)),
                  pl.BlockSpec((1, C), lambda i: (0, 0)),
                  pl.BlockSpec((C, off_dim + aw_dim), lambda i: (0, 0)),
                  pl.BlockSpec((1, off_dim + aw_dim), lambda i: (0, 0))],
        out_specs=pl.BlockSpec((bm, Nout), lambda i: (i, 0)),
        compiler_params=_PAR,
    )(src2d, pos2d, norm_w.reshape(1, C), val_w, val_b.reshape(1, C), woa, boa)
    return out[:, :C], out[:, C:C + off_dim], out[:, C + off_dim:]


def add_mlp(a2d, b2d, norm_w, w1, w2, star_sb):
    # fused residual + norm2 + Mlp + residual, one call over all scales.
    M, C = a2d.shape
    H = w1.shape[1]
    bm, g = _row_grid(M)
    return pl.pallas_call(
        _add_mlp_kernel,
        out_shape=jax.ShapeDtypeStruct((M, C), a2d.dtype),
        grid=(g,),
        in_specs=[pl.BlockSpec((bm, C), lambda i: (i, 0)),
                  pl.BlockSpec((bm, C), lambda i: (i, 0)),
                  pl.BlockSpec((1, C), lambda i: (0, 0)),
                  pl.BlockSpec((C, H), lambda i: (0, 0)),
                  pl.BlockSpec((H, C), lambda i: (0, 0)),
                  pl.BlockSpec(memory_space=pltpu.MemorySpace.SMEM)],
        out_specs=pl.BlockSpec((bm, C), lambda i: (i, 0)),
        compiler_params=_PAR,
    )(a2d, b2d, norm_w.reshape(1, C), w1, w2, star_sb)


def conv3x3_nhwc(x, w, b):
    # 3x3 "same" conv. The spatially-padded image is kept flat in VMEM and the conv is
    # computed as 9 shifted (rows, C) x (C, Cout) matmuls accumulated in-kernel
    # (no im2col HBM blow-up). The 2 junk columns per output row are sliced off in JAX.
    B, H, W, C = x.shape
    Cout = w.shape[-1]
    Wp = W + 2
    Mout = H * Wp
    Mout_r = _round_up(Mout, 8)
    Npad = (H + 2) * Wp
    Npad_r = _round_up(max(Npad, 2 * Wp + 2 + Mout_r), 8)

    xp = jnp.pad(x, ((0, 0), (1, 1), (1, 1), (0, 0))).reshape(B, Npad, C)
    xp = jnp.pad(xp, ((0, 0), (0, Npad_r - Npad), (0, 0))).reshape(B * Npad_r, C)
    wt = w.reshape(9, C, Cout)

    def kern(x_ref, w_ref, b_ref, o_ref):
        acc = jnp.zeros((Mout_r, Cout), jnp.float32)
        for t in range(9):
            off = (t // 3) * Wp + (t % 3)
            acc = acc + jnp.dot(x_ref[off:off + Mout_r, :], w_ref[t],
                                preferred_element_type=jnp.float32)
        o_ref[...] = (acc + b_ref[...]).astype(o_ref.dtype)

    out = pl.pallas_call(
        kern,
        out_shape=jax.ShapeDtypeStruct((B * Mout_r, Cout), x.dtype),
        grid=(B,),
        in_specs=[pl.BlockSpec((Npad_r, C), lambda i: (i, 0)),
                  pl.BlockSpec((9, C, Cout), lambda i: (0, 0, 0)),
                  pl.BlockSpec((1, Cout), lambda i: (0, 0))],
        out_specs=pl.BlockSpec((Mout_r, Cout), lambda i: (i, 0)),
        compiler_params=_PAR,
    )(xp, wt, b.reshape(1, Cout))
    out = out.reshape(B, Mout_r, Cout)[:, :Mout].reshape(B, H, Wp, Cout)[:, :, :W, :]
    return out


# ----------------------------- plain-JAX glue -----------------------------

def _interp_matrix_1d(out_size, in_size):
    # PyTorch F.interpolate(mode='bilinear', align_corners=False), as a dense matrix.
    scale = in_size / out_size
    src = (jnp.arange(out_size, dtype=jnp.float32) + 0.5) * scale - 0.5
    src = jnp.maximum(src, 0.0)
    i0 = jnp.minimum(jnp.floor(src), in_size - 1).astype(jnp.int32)
    i1 = jnp.minimum(i0 + 1, in_size - 1)
    w1 = src - i0.astype(jnp.float32)
    w0 = 1.0 - w1
    cols = jnp.arange(in_size, dtype=jnp.int32)
    return (w0[:, None] * (i0[:, None] == cols).astype(jnp.float32)
            + w1[:, None] * (i1[:, None] == cols).astype(jnp.float32))


def bilinear_resize_nhwc(x, out_h, out_w):
    # separable bilinear upsample as two small matmuls (MXU) instead of gathers
    B, h, w, C = x.shape
    My = _interp_matrix_1d(out_h, h)
    Mx = _interp_matrix_1d(out_w, w)
    t = jnp.einsum('ay,byxc->baxc', My, x)
    return jnp.einsum('ox,baxc->baoc', Mx, t)


def _bilinear_onehot(loc, h, w):
    # grid_sample(bilinear, padding_mode='zeros', align_corners=False) as a dense
    # (.., h*w) interpolation-weight matrix; sampling becomes an MXU contraction.
    x = loc[..., 0] * w - 0.5
    y = loc[..., 1] * h - 0.5
    x0 = jnp.floor(x)
    y0 = jnp.floor(y)
    fx = x - x0
    fy = y - y0
    cols = jnp.arange(h * w, dtype=jnp.int32)
    out = jnp.zeros(loc.shape[:-1] + (h * w,), jnp.float32)
    for dy in (0, 1):
        for dx in (0, 1):
            xi = x0 + dx
            yi = y0 + dy
            valid = (xi >= 0) & (xi <= w - 1) & (yi >= 0) & (yi <= h - 1)
            wgt = (fx if dx else 1.0 - fx) * (fy if dy else 1.0 - fy)
            idx = (jnp.clip(yi, 0, h - 1) * w + jnp.clip(xi, 0, w - 1)).astype(jnp.int32)
            onehot = (idx[..., None] == cols).astype(jnp.float32)
            out = out + (wgt * valid.astype(jnp.float32))[..., None] * onehot
    return out


def ms_deform_attn(p, norm1_w, src, pos, reference_points, spatial_shapes,
                   n_heads, n_levels, n_points):
    # Multi-scale deformable attention with norm1 fused into the input projections.
    B, Lq, C = src.shape
    D = C // n_heads

    value, off, aw = attn_input_proj(
        src.reshape(-1, C), pos.reshape(-1, C), norm1_w,
        p['val_w'], p['val_b'], p['off_w'], p['off_b'], p['aw_w'], p['aw_b'],
        n_heads, n_levels, n_points)
    value = value.reshape(B, Lq, n_heads, D)
    off = off.reshape(B, Lq, n_heads, n_levels, n_points, 2)
    aw = aw.reshape(B, Lq, n_heads, n_levels, n_points)

    shapes = jnp.asarray(spatial_shapes, jnp.float32)               # (L, 2) = (H, W)
    norm = jnp.stack([shapes[:, 1], shapes[:, 0]], axis=-1)         # (L, 2) = (W, H)
    loc = reference_points[:, :, None, :, None, :] + off / norm[None, None, None, :, None, :]

    # TODO(synk): the data-dependent bilinear gather is expressed as one-hot interp
    # matrices contracted on the MXU in plain JAX (no clean BlockSpec expression).
    start = 0
    out = jnp.zeros((B, Lq, n_heads, D), jnp.float32)
    for lid, (h_, w_) in enumerate(spatial_shapes):
        hw = h_ * w_
        v_l = value[:, start:start + hw]                            # (B, hw, nH, D)
        Wl = _bilinear_onehot(loc[:, :, :, lid], h_, w_)            # (B, Lq, nH, P, hw)
        Al = jnp.einsum('bqhp,bqhpk->bqhk', aw[:, :, :, lid], Wl)   # fold attn weights
        out = out + jnp.einsum('bqhk,bkhd->bqhd', Al, v_l)
        start += hw

    out = out.reshape(B, Lq, C).astype(src.dtype)
    out = linear_pallas(out.reshape(-1, C), p['out_w'], p['out_b']).reshape(B, Lq, C)
    return out


def forward_fpn(params, fpns, fpn_and_deform_feats, num_fpn_only):
    ret = list(fpns) + list(fpn_and_deform_feats)
    ret = ret[::-1]                                                 # coarse -> fine
    output = [ret[0]]
    for idx, f in enumerate(ret[1:]):
        up = bilinear_resize_nhwc(output[-1], f.shape[1], f.shape[2])
        f = f + up
        f = conv3x3_nhwc(f, params['alias'][idx]['w'], params['alias'][idx]['b'])
        output.append(f)
    output = output[-num_fpn_only:][::-1]
    return output


def encoder_layer_forward(params, cfg, src, pos, fpns, scale_to_hw_length,
                          reference_points, spatial_shapes, level_start_index,
                          padding_mask=None):
    del level_start_index, padding_mask        # no padding; level offsets derived statically
    C = cfg['d_model']
    scale_hw_length = [h * w for (h, w) in scale_to_hw_length]
    B, N, _ = src.shape

    # norm1 on the FPN-only scales: one pallas_call over all fpn rows concatenated
    if fpns:
        fpn_rows = jnp.concatenate([f.reshape(-1, C) for f in fpns], axis=0)
        fpn_rows = layer_norm_nb(fpn_rows, params['norm1_w'])
        fpns2, o = [], 0
        for f in fpns:
            n = f.shape[0] * f.shape[1] * f.shape[2]
            fpns2.append(fpn_rows[o:o + n].reshape(f.shape))
            o += n
    else:
        fpns2 = []

    # deformable self-attention (norm1 on src fused into the projection kernel)
    src2 = ms_deform_attn(params['attn'], params['norm1_w'], src, pos,
                          reference_points, spatial_shapes,
                          cfg['n_heads'], cfg['n_levels'], cfg['n_points'])

    # split HW tokens back into per-scale maps
    total = sum(scale_hw_length)
    hw = src2[:, -total:]
    splits = [int(s) for s in np.cumsum(scale_hw_length)[:-1]]
    hw_feats = jnp.split(hw, splits, axis=1)
    fpn_and_deform_feats = [
        hw_feats[i].reshape(B, scale_to_hw_length[i][0], scale_to_hw_length[i][1], C)
        for i in cfg['fpn_and_deform_idxs']]

    fpns2 = forward_fpn(params, fpns2, fpn_and_deform_feats, num_fpn_only=len(fpns))

    # fused: (x + attn/fpn-branch) + mlp(norm2(..)) over src AND all fpn scales
    # (DropPath == Identity since drop_path = 0)
    a_rows = jnp.concatenate([src.reshape(-1, C)] + [f.reshape(-1, C) for f in fpns], axis=0)
    b_rows = jnp.concatenate([src2.reshape(-1, C)] + [f.reshape(-1, C) for f in fpns2], axis=0)
    mlp = params['mlp']
    out_rows = add_mlp(a_rows, b_rows, params['norm2_w'], mlp['w1'], mlp['w2'],
                       mlp['star_sb'])

    src_out = out_rows[:B * N].reshape(B, N, C)
    fpn_out, o = [], B * N
    for f in fpns:
        n = f.shape[0] * f.shape[1] * f.shape[2]
        fpn_out.append(out_rows[o:o + n].reshape(f.shape))
        o += n
    return src_out, fpn_out


# ----------------------------- params -----------------------------

def init_params(key, C, heads, levels, points, hidden, n_convs):
    ks = jax.random.split(key, 16)

    def nrm(k, shape, std=0.02):
        return jax.random.normal(k, shape, jnp.float32) * std

    # deformable-DETR-style offsets-bias init
    thetas = jnp.arange(heads, dtype=jnp.float32) * (2.0 * math.pi / heads)
    grid = jnp.stack([jnp.cos(thetas), jnp.sin(thetas)], -1)
    grid = grid / jnp.abs(grid).max(-1, keepdims=True)
    grid = jnp.tile(grid[:, None, None, :], (1, levels, points, 1)) * \
        (jnp.arange(points, dtype=jnp.float32) + 1.0)[None, None, :, None]

    params = {
        'norm1_w': jnp.ones((C,), jnp.float32),
        'norm2_w': jnp.ones((C,), jnp.float32),
        'attn': {
            'off_w': jnp.zeros((C, heads * levels * points * 2), jnp.float32),
            'off_b': grid.reshape(-1),
            'aw_w': nrm(ks[0], (C, heads * levels * points)),
            'aw_b': jnp.zeros((heads * levels * points,), jnp.float32),
            'val_w': nrm(ks[1], (C, C)),
            'val_b': jnp.zeros((C,), jnp.float32),
            'out_w': nrm(ks[2], (C, C)),
            'out_b': jnp.zeros((C,), jnp.float32),
        },
        'alias': [{'w': nrm(ks[3 + i], (3, 3, C, C)),
                   'b': jnp.zeros((C,), jnp.float32)} for i in range(n_convs)],
        'mlp': {'w1': nrm(ks[8], (C, hidden)),
                'w2': nrm(ks[9], (hidden, C)),
                'star_sb': jnp.array([0.8944, -0.4472], jnp.float32)},
    }
    return params


# ----------------------------- demo -----------------------------

if __name__ == "__main__":
    C, heads, levels, points, hidden = 32, 4, 2, 4, 128
    B = 2
    deform_shapes = [(8, 8), (4, 4)]     # deform scales: res3 (stride 8), res4 (stride 16)
    # fpn scales = [res2, res3, res4]; fpn-only = res2 -> 2 alias convs, 1 fpn input
    cfg = dict(d_model=C, n_heads=heads, n_levels=levels, n_points=points,
               fpn_and_deform_idxs=[0, 1])

    params = init_params(jax.random.PRNGKey(0), C, heads, levels, points, hidden, n_convs=2)

    N = sum(h * w for h, w in deform_shapes)
    k1, k2, k3 = jax.random.split(jax.random.PRNGKey(0), 3)
    src = jax.random.normal(k1, (B, N, C), jnp.float32)
    pos = jax.random.normal(k2, (B, N, C), jnp.float32) * 0.1
    fpns = [jax.random.normal(k3, (B, 16, 16, C), jnp.float32)]

    # reference points: normalized token centers, tiled over levels
    refs = []
    for (h_, w_) in deform_shapes:
        ry = (jnp.arange(h_, dtype=jnp.float32) + 0.5) / h_
        rx = (jnp.arange(w_, dtype=jnp.float32) + 0.5) / w_
        gy, gx = jnp.meshgrid(ry, rx, indexing='ij')
        refs.append(jnp.stack([gx.reshape(-1), gy.reshape(-1)], -1))
    reference_points = jnp.tile(jnp.concatenate(refs, 0)[None, :, None, :], (B, 1, levels, 1))

    spatial_shapes = deform_shapes
    level_start_index = [0] + list(np.cumsum([h * w for h, w in deform_shapes])[:-1])

    out_src, out_fpns = encoder_layer_forward(
        params, cfg, src, pos, fpns, deform_shapes, reference_points,
        spatial_shapes, level_start_index, padding_mask=None)

    jax.block_until_ready(out_src)
    for f in out_fpns:
        jax.block_until_ready(f)

    assert out_src.shape == (B, N, C)
    assert out_fpns[0].shape == (B, 16, 16, C)
    assert bool(jnp.all(jnp.isfinite(out_src))) and bool(jnp.all(jnp.isfinite(out_fpns[0])))
    print("KERNEL_OK")
</pallas_src>

<mosaic_0001>
module attributes {stable_mosaic.version = 11 : i64} {
  func.func @_ln_kernel(%arg0: i32, %arg1: memref<256x32xf32, #tpu.memory_space<vmem>>, %arg2: memref<1x32xf32, #tpu.memory_space<vmem>>, %arg3: memref<256x32xf32, #tpu.memory_space<vmem>>) attributes {dimension_semantics = [#tpu.dimension_semantics<parallel>], iteration_bounds = array<i64: 2>, scalar_prefetch = 0 : i64, scratch_operands = 0 : i64, tpu.core_type = #tpu.core_type<tc>, window_params = [{transform_indices = @transform_0, window_bounds = array<i64: 256, 32>}, {pipeline_mode = #tpu.pipeline_mode<synchronous>, transform_indices = @transform_1, window_bounds = array<i64: 1, 32>}, {transform_indices = @transform_2, window_bounds = array<i64: 256, 32>}]} {
    %c0 = arith.constant 0 : index
    %c0_0 = arith.constant 0 : index
    %0 = vector.load %arg1[%c0, %c0_0] : memref<256x32xf32, #tpu.memory_space<vmem>>, vector<256x32xf32>
    %cst = arith.constant dense<0.000000e+00> : vector<256xf32>
    %1 = vector.multi_reduction <add>, %0, %cst [1] : vector<256x32xf32> to vector<256xf32>
    %2 = vector.shape_cast %1 : vector<256xf32> to vector<256x1xf32>
    %cst_1 = arith.constant 3.200000e+01 : f32
    %3 = vector.broadcast %cst_1 : f32 to vector<256x1xf32>
    %4 = arith.divf %2, %3 : vector<256x1xf32>
    %5 = vector.broadcast %4 : vector<256x1xf32> to vector<256x32xf32>
    %6 = arith.subf %0, %5 : vector<256x32xf32>
    %7 = arith.mulf %6, %6 : vector<256x32xf32>
    %cst_2 = arith.constant dense<0.000000e+00> : vector<256xf32>
    %8 = vector.multi_reduction <add>, %7, %cst_2 [1] : vector<256x32xf32> to vector<256xf32>
    %9 = vector.shape_cast %8 : vector<256xf32> to vector<256x1xf32>
    %cst_3 = arith.constant 3.200000e+01 : f32
    %10 = vector.broadcast %cst_3 : f32 to vector<256x1xf32>
    %11 = arith.divf %9, %10 : vector<256x1xf32>
    %12 = vector.broadcast %4 : vector<256x1xf32> to vector<256x32xf32>
    %13 = arith.subf %0, %12 : vector<256x32xf32>
    %cst_4 = arith.constant 9.99999997E-7 : f32
    %14 = vector.broadcast %cst_4 : f32 to vector<256x1xf32>
    %15 = arith.addf %11, %14 : vector<256x1xf32>
    %16 = math.rsqrt %15 : vector<256x1xf32>
    %17 = vector.broadcast %16 : vector<256x1xf32> to vector<256x32xf32>
    %18 = arith.mulf %13, %17 : vector<256x32xf32>
    %c0_5 = arith.constant 0 : index
    %c0_6 = arith.constant 0 : index
    %19 = vector.load %arg2[%c0_5, %c0_6] : memref<1x32xf32, #tpu.memory_space<vmem>>, vector<1x32xf32>
    %20 = vector.broadcast %19 : vector<1x32xf32> to vector<256x32xf32>
    %21 = arith.mulf %18, %20 : vector<256x32xf32>
    %c0_7 = arith.constant 0 : index
    %c0_8 = arith.constant 0 : index
    %22 = vector.load %arg3[%c0_7, %c0_8] : memref<256x32xf32, #tpu.memory_space<vmem>>, vector<256x32xf32>
    tpu.vector_store %arg3[%c0_7, %c0_8], %21 {strides = array<i32>} : memref<256x32xf32, #tpu.memory_space<vmem>>, vector<256x32xf32>,
    return
  }
  func.func @transform_0(%arg0: i32) -> (i32, i32) {
    %c0_i32 = arith.constant 0 : i32
    %c0_i32_0 = arith.constant 0 : i32
    return %arg0, %c0_i32 : i32, i32
  }
  func.func @transform_1(%arg0: i32) -> (i32, i32) {
    %c0_i32 = arith.constant 0 : i32
    %c0_i32_0 = arith.constant 0 : i32
    %c0_i32_1 = arith.constant 0 : i32
    return %c0_i32, %c0_i32_0 : i32, i32
  }
  func.func @transform_2(%arg0: i32) -> (i32, i32) {
    %c0_i32 = arith.constant 0 : i32
    %c0_i32_0 = arith.constant 0 : i32
    return %arg0, %c0_i32 : i32, i32
  }
}

</mosaic_0001>

<bundles_post_ra>
// kernel: tpu_custom_call.1
= control target key start
LH: loop header
LB: loop body
LE: loop exit
PB: predicated region body
PF: predicated region fallthrough
CT: control target
= control target key end

     0   :  { %s831_s9 = smov 0   ;;  %s1344_s0 = inlined_call_operand.vmem [shape: f32[512,32], index: 0, kind: input, shape index: {}]   ;;  %s1345_s1 = inlined_call_operand.vmem [shape: f32[1,32], index: 1, kind: input, shape index: {}]   ;;  %s1346_s2 = inlined_call_operand.vmem [shape: f32[512,32], index: 2, kind: output, shape index: {}]  }
   0x1 LB: > { %s724_s10 = sadd.s32 4294967295, %s814_s9   ;;  %p728_p0 = scmp.ge.s32.totalorder %s814_s9, 1  ;;  %s814_s9 = sphi %s831_s9, %s12_s9  }
   0x2   : > { %p113_p1 = scmp.lt.s32.totalorder %s814_s9, 3 }
   0x4   : > { %p114_p2 = pnand %p728_p0, %p113_p1 }
   0x5   : > { %s729_s11 = sshll.u32 (!%p114_p2), %s724_s10, 5  ;;  %vm179_vm0 = vcmask (!%p114_p2), 261120  }
   0x6   : > { %117 = sbr.rel (%p114_p2) target bundleno = 393 (0x189), region = 28  ;;  %p136_p3 = scmp.lt.s32.totalorder (!%p114_p2), %s729_s11, 63 }
   0xd   : > { %s1348_s11 = smov (!%p136_p3, %s729_s11), 63 }
   0xe   : > { %s730_s12 = sshll.u32 %s1348_s11, 3 }
   0xf   : > { %s847_s15 = scalar_lea.vmem %s1344_s0, %s730_s12  ;;  %s1212_s20 = scalar_lea.vmem %s1346_s2, %s730_s12 }
  0x10   : > { %v850_v0 = vld [vmem:[%s847_s15] sm:$0xff]  ;;  %v853_v1 = vld [vmem:[%s847_s15 + $0x10] sm:$0xff]  ;;  %v856_v2 = vld [vmem:[%s847_s15 + $0x8] sm:$0xff] }
  0x11   : > { %v180_v3 = vsel %vm179_vm0, %v850_v0, 0.0  ;;  %v186_v4 = vsel %vm179_vm0, %v853_v1, 0.0  ;;  %v863_v5 = vld [vmem:[%s847_s15 + $0x18] sm:$0xff]  ;;  %v183_v6 = vsel %vm179_vm0, %v856_v2, 0.0  ;;  %v870_v8 = vld [vmem:[%s847_s15 + $0x20] sm:$0xff]  ;;  %v873_v9 = vld [vmem:[%s847_s15 + $0x28] sm:$0xff] }
  0x12   : > { %181 = vadd.xlane.f32.xlu0 %v180_v3  ;;  %187 = vadd.xlane.f32.xlu1 %v186_v4  ;;  %v189_v7 = vsel %vm179_vm0, %v863_v5, 0.0  ;;  %v192_v10 = vsel %vm179_vm0, %v870_v8, 0.0  ;;  %v195_v11 = vsel %vm179_vm0, %v873_v9, 0.0  ;;  %v880_v12 = vld [vmem:[%s847_s15 + $0x30] sm:$0xff]  ;;  %v883_v13 = vld [vmem:[%s847_s15 + $0x38] sm:$0xff]  ;;  %v890_v16 = vld [vmem:[%s847_s15 + $0x40] sm:$0xff] }
  0x13   : > { %v198_v14 = vsel %vm179_vm0, %v880_v12, 0.0  ;;  %v201_v15 = vsel %vm179_vm0, %v883_v13, 0.0  ;;  %v893_v17 = vld [vmem:[%s847_s15 + $0x48] sm:$0xff]  ;;  %v204_v18 = vsel %vm179_vm0, %v890_v16, 0.0  ;;  %v900_v20 = vld [vmem:[%s847_s15 + $0x50] sm:$0xff]  ;;  %v903_v21 = vld [vmem:[%s847_s15 + $0x58] sm:$0xff] }
  0x14   : > { %v207_v19 = vsel %vm179_vm0, %v893_v17, 0.0  ;;  %v210_v22 = vsel %vm179_vm0, %v900_v20, 0.0  ;;  %v213_v23 = vsel %vm179_vm0, %v903_v21, 0.0  ;;  %v910_v24 = vld [vmem:[%s847_s15 + $0x60] sm:$0xff]  ;;  %v913_v25 = vld [vmem:[%s847_s15 + $0x68] sm:$0xff]  ;;  %v920_v28 = vld [vmem:[%s847_s15 + $0x70] sm:$0xff] }
  0x15   : > { %v216_v26 = vsel %vm179_vm0, %v910_v24, 0.0  ;;  %v219_v27 = vsel %vm179_vm0, %v913_v25, 0.0  ;;  %v923_v29 = vld [vmem:[%s847_s15 + $0x78] sm:$0xff]  ;;  %v222_v30 = vsel %vm179_vm0, %v920_v28, 0.0  ;;  %v930_v32 = vld [vmem:[%s847_s15 + $0x80] sm:$0xff]  ;;  %v933_v33 = vld [vmem:[%s847_s15 + $0x88] sm:$0xff] }
  0x16   : > { %184 = vadd.xlane.f32.xlu0 %v183_v6  ;;  %190 = vadd.xlane.f32.xlu1 %v189_v7  ;;  %v225_v31 = vsel %vm179_vm0, %v923_v29, 0.0  ;;  %v228_v34 = vsel %vm179_vm0, %v930_v32, 0.0  ;;  %v231_v35 = vsel %vm179_vm0, %v933_v33, 0.0  ;;  %v940_v36 = vld [vmem:[%s847_s15 + $0x90] sm:$0xff]  ;;  %v943_v37 = vld [vmem:[%s847_s15 + $0x98] sm:$0xff]  ;;  %v950_v40 = vld [vmem:[%s847_s15 + $0xa0] sm:$0xff] }
  0x17   : > { %v234_v38 = vsel %vm179_vm0, %v940_v36, 0.0  ;;  %v237_v39 = vsel %vm179_vm0, %v943_v37, 0.0  ;;  %v953_v41 = vld [vmem:[%s847_s15 + $0xa8] sm:$0xff]  ;;  %v240_v42 = vsel %vm179_vm0, %v950_v40, 0.0  ;;  %v960_v44 = vld [vmem:[%s847_s15 + $0xb0] sm:$0xff]  ;;  %v963_v45 = vld [vmem:[%s847_s15 + $0xb8] sm:$0xff] }
  0x18   : > { %v243_v43 = vsel %vm179_vm0, %v953_v41, 0.0  ;;  %v246_v46 = vsel %vm179_vm0, %v960_v44, 0.0  ;;  %v249_v47 = vsel %vm179_vm0, %v963_v45, 0.0  ;;  %v970_v48 = vld [vmem:[%s847_s15 + $0xc0] sm:$0xff]  ;;  %v973_v49 = vld [vmem:[%s847_s15 + $0xc8] sm:$0xff]  ;;  %v980_v52 = vld [vmem:[%s847_s15 + $0xd0] sm:$0xff] }
  0x19   : > { %v252_v50 = vsel %vm179_vm0, %v970_v48, 0.0  ;;  %v255_v51 = vsel %vm179_vm0, %v973_v49, 0.0  ;;  %v983_v53 = vld [vmem:[%s847_s15 + $0xd8] sm:$0xff]  ;;  %v258_v54 = vsel %vm179_vm0, %v980_v52, 0.0  ;;  %v990_v56 = vld [vmem:[%s847_s15 + $0xe0] sm:$0xff]  ;;  %v993_v57 = vld [vmem:[%s847_s15 + $0xe8] sm:$0xff] }
  0x1a   : > { %193 = vadd.xlane.f32.xlu0 %v192_v10  ;;  %196 = vadd.xlane.f32.xlu1 %v195_v11  ;;  %v261_v55 = vsel %vm179_vm0, %v983_v53, 0.0  ;;  %v264_v58 = vsel %vm179_vm0, %v990_v56, 0.0  ;;  %v267_v59 = vsel %vm179_vm0, %v993_v57, 0.0  ;;  %v1000_v60 = vld [vmem:[%s847_s15 + $0xf0] sm:$0xff]  ;;  %v1003_v61 = vld [vmem:[%s847_s15 + $0xf8] sm:$0xff] }
  0x1b   : > { %v270_v62 = vsel %vm179_vm0, %v1000_v60, 0.0  ;;  %v273_v63 = vsel %vm179_vm0, %v1003_v61, 0.0 }
  0x1e   : > { %199 = vadd.xlane.f32.xlu0 %v198_v14  ;;  %202 = vadd.xlane.f32.xlu1 %v201_v15 }
  0x22   : > { %205 = vadd.xlane.f32.xlu0 %v204_v18  ;;  %208 = vadd.xlane.f32.xlu1 %v207_v19 }
  0x26   : > { %211 = vadd.xlane.f32.xlu0 %v210_v22  ;;  %214 = vadd.xlane.f32.xlu1 %v213_v23 }
  0x2a   : > { %217 = vadd.xlane.f32.xlu0 %v216_v26  ;;  %220 = vadd.xlane.f32.xlu1 %v219_v27 }
  0x2e   : > { %223 = vadd.xlane.f32.xlu0 %v222_v30  ;;  %226 = vadd.xlane.f32.xlu1 %v225_v31 }
  0x32   : > { %229 = vadd.xlane.f32.xlu0 %v228_v34  ;;  %232 = vadd.xlane.f32.xlu1 %v231_v35 }
  0x36   : > { %235 = vadd.xlane.f32.xlu0 %v234_v38  ;;  %238 = vadd.xlane.f32.xlu1 %v237_v39 }
  0x3a   : > { %241 = vadd.xlane.f32.xlu0 %v240_v42  ;;  %244 = vadd.xlane.f32.xlu1 %v243_v43 }
  0x3e   : > { %247 = vadd.xlane.f32.xlu0 %v246_v46  ;;  %250 = vadd.xlane.f32.xlu1 %v249_v47 }
  0x42   : > { %253 = vadd.xlane.f32.xlu0 %v252_v50  ;;  %256 = vadd.xlane.f32.xlu1 %v255_v51 }
  0x46   : > { %259 = vadd.xlane.f32.xlu0 %v258_v54  ;;  %262 = vadd.xlane.f32.xlu1 %v261_v55 }
  0x4a   : > { %265 = vadd.xlane.f32.xlu0 %v264_v58  ;;  %268 = vadd.xlane.f32.xlu1 %v267_v59 }
  0x4e   : > { %271 = vadd.xlane.f32.xlu0 %v270_v62  ;;  %274 = vadd.xlane.f32.xlu1 %v273_v63 }
  0x9f   : > { %v182_v3 = vpop.xlane.xlu0 %181  ;;  %v188_v4 = vpop.xlane.xlu1 %187 }
  0xa0   : > { %v277_v6 = vmul.f32 0.03125, %v182_v3  ;;  %v279_v7 = vmul.f32 0.03125, %v188_v4 }
  0xa2   : > { %v1010_v10 = vsub.f32 %v850_v0, %v277_v6  ;;  %v1013_v11 = vsub.f32 %v853_v1, %v279_v7 }
  0xa3   : > { %v185_v14 = vpop.xlane.xlu0 %184  ;;  %v191_v15 = vpop.xlane.xlu1 %190 }
  0xa4   : > { %v278_v18 = vmul.f32 0.03125, %v185_v14  ;;  %v280_v19 = vmul.f32 0.03125, %v191_v15  ;;  %v341_v22 = vmul.f32 %v1010_v10, %v1010_v10  ;;  %v343_v23 = vmul.f32 %v1013_v11, %v1013_v11 }
  0xa6   : > { %v1020_v26 = vsub.f32 %v856_v2, %v278_v18  ;;  %v1023_v27 = vsub.f32 %v863_v5, %v280_v19  ;;  %v373_v0 = vsel %vm179_vm0, %v341_v22, 0.0  ;;  %v379_v31 = vsel %vm179_vm0, %v343_v23, 0.0 }
  0xa7   : > { %374 = vadd.xlane.f32.xlu0 %v373_v0  ;;  %v194_v1 = vpop.xlane.xlu0 %193  ;;  %v197_v30 = vpop.xlane.xlu1 %196 }
  0xa8   : > { %v281_v34 = vmul.f32 0.03125, %v194_v1  ;;  %v282_v35 = vmul.f32 0.03125, %v197_v30  ;;  %v342_v38 = vmul.f32 %v1020_v26, %v1020_v26  ;;  %v344_v39 = vmul.f32 %v1023_v27, %v1023_v27 }
  0xaa   : > { %v1032_v2 = vsub.f32 %v870_v8, %v281_v34  ;;  %v1035_v5 = vsub.f32 %v873_v9, %v282_v35  ;;  %v376_v42 = vsel %vm179_vm0, %v342_v38, 0.0  ;;  %v382_v47 = vsel %vm179_vm0, %v344_v39, 0.0 }
  0xab   : > { %380 = vadd.xlane.f32.xlu0 %v379_v31  ;;  %377 = vadd.xlane.f32.xlu1 %v376_v42  ;;  %v200_v43 = vpop.xlane.xlu0 %199  ;;  %v203_v46 = vpop.xlane.xlu1 %202 }
  0xac   : > { %v283_v50 = vmul.f32 0.03125, %v200_v43  ;;  %v284_v51 = vmul.f32 0.03125, %v203_v46  ;;  %v345_v54 = vmul.f32 %v1032_v2, %v1032_v2  ;;  %v346_v8 = vmul.f32 %v1035_v5, %v1035_v5 }
  0xae   : > { %v1044_v55 = vsub.f32 %v880_v12, %v283_v50  ;;  %v1047_v9 = vsub.f32 %v883_v13, %v284_v51  ;;  %v385_v58 = vsel %vm179_vm0, %v345_v54, 0.0  ;;  %v388_v63 = vsel %vm179_vm0, %v346_v8, 0.0 }
  0xaf   : > { %383 = vadd.xlane.f32.xlu1 %v382_v47  ;;  %386 = vadd.xlane.f32.xlu0 %v385_v58  ;;  %v206_v59 = vpop.xlane.xlu0 %205  ;;  %v209_v62 = vpop.xlane.xlu1 %208 }
  0xb0   : > { %v285_v3 = vmul.f32 0.03125, %v206_v59  ;;  %v286_v4 = vmul.f32 0.03125, %v209_v62  ;;  %v347_v6 = vmul.f32 %v1044_v55, %v1044_v55  ;;  %v348_v12 = vmul.f32 %v1047_v9, %v1047_v9 }
  0xb2   : > { %v1056_v7 = vsub.f32 %v890_v16, %v285_v3  ;;  %v1059_v13 = vsub.f32 %v893_v17, %v286_v4  ;;  %v391_v14 = vsel %vm179_vm0, %v347_v6, 0.0  ;;  %v394_v19 = vsel %vm179_vm0, %v348_v12, 0.0 }
  0xb3   : > { %389 = vadd.xlane.f32.xlu1 %v388_v63  ;;  %392 = vadd.xlane.f32.xlu0 %v391_v14  ;;  %v212_v15 = vpop.xlane.xlu0 %211  ;;  %v215_v18 = vpop.xlane.xlu1 %214 }
  0xb4   : > { %v287_v22 = vmul.f32 0.03125, %v212_v15  ;;  %v288_v23 = vmul.f32 0.03125, %v215_v18  ;;  %v349_v0 = vmul.f32 %v1056_v7, %v1056_v7  ;;  %v350_v16 = vmul.f32 %v1059_v13, %v1059_v13 }
  0xb6   : > { %v1068_v1 = vsub.f32 %v900_v20, %v287_v22  ;;  %v1071_v17 = vsub.f32 %v903_v21, %v288_v23  ;;  %v397_v30 = vsel %vm179_vm0, %v349_v0, 0.0  ;;  %v400_v35 = vsel %vm179_vm0, %v350_v16, 0.0 }
  0xb7   : > { %395 = vadd.xlane.f32.xlu1 %v394_v19  ;;  %398 = vadd.xlane.f32.xlu0 %v397_v30  ;;  %v218_v31 = vpop.xlane.xlu0 %217  ;;  %v221_v34 = vpop.xlane.xlu1 %220 }
  0xb8   : > { %v289_v38 = vmul.f32 0.03125, %v218_v31  ;;  %v290_v39 = vmul.f32 0.03125, %v221_v34  ;;  %v351_v42 = vmul.f32 %v1068_v1, %v1068_v1  ;;  %v352_v20 = vmul.f32 %v1071_v17, %v1071_v17 }
  0xba   : > { %v1080_v43 = vsub.f32 %v910_v24, %v289_v38  ;;  %v1083_v21 = vsub.f32 %v913_v25, %v290_v39  ;;  %v403_v46 = vsel %vm179_vm0, %v351_v42, 0.0  ;;  %v406_v51 = vsel %vm179_vm0, %v352_v20, 0.0 }
  0xbb   : > { %401 = vadd.xlane.f32.xlu1 %v400_v35  ;;  %404 = vadd.xlane.f32.xlu0 %v403_v46  ;;  %v224_v47 = vpop.xlane.xlu0 %223  ;;  %v227_v50 = vpop.xlane.xlu1 %226 }
  0xbc   : > { %v291_v54 = vmul.f32 0.03125, %v224_v47  ;;  %v292_v8 = vmul.f32 0.03125, %v227_v50  ;;  %v353_v58 = vmul.f32 %v1080_v43, %v1080_v43  ;;  %v354_v24 = vmul.f32 %v1083_v21, %v1083_v21 }
  0xbe   : > { %v1092_v59 = vsub.f32 %v920_v28, %v291_v54  ;;  %v1095_v25 = vsub.f32 %v923_v29, %v292_v8  ;;  %v409_v62 = vsel %vm179_vm0, %v353_v58, 0.0  ;;  %v412_v4 = vsel %vm179_vm0, %v354_v24, 0.0 }
  0xbf   : > { %407 = vadd.xlane.f32.xlu1 %v406_v51  ;;  %410 = vadd.xlane.f32.xlu0 %v409_v62  ;;  %v230_v63 = vpop.xlane.xlu0 %229  ;;  %v233_v3 = vpop.xlane.xlu1 %232 }
  0xc0   : > { %v293_v6 = vmul.f32 0.03125, %v230_v63  ;;  %v294_v12 = vmul.f32 0.03125, %v233_v3  ;;  %v355_v14 = vmul.f32 %v1092_v59, %v1092_v59  ;;  %v356_v28 = vmul.f32 %v1095_v25, %v1095_v25 }
  0xc2   : > { %v1104_v15 = vsub.f32 %v930_v32, %v293_v6  ;;  %v1107_v29 = vsub.f32 %v933_v33, %v294_v12  ;;  %v415_v18 = vsel %vm179_vm0, %v355_v14, 0.0  ;;  %v418_v23 = vsel %vm179_vm0, %v356_v28, 0.0 }
  0xc3   : > { %413 = vadd.xlane.f32.xlu1 %v412_v4  ;;  %416 = vadd.xlane.f32.xlu0 %v415_v18  ;;  %v236_v19 = vpop.xlane.xlu0 %235  ;;  %v239_v22 = vpop.xlane.xlu1 %238 }
  0xc4   : > { %v295_v0 = vmul.f32 0.03125, %v236_v19  ;;  %v296_v16 = vmul.f32 0.03125, %v239_v22  ;;  %v357_v30 = vmul.f32 %v1104_v15, %v1104_v15  ;;  %v358_v32 = vmul.f32 %v1107_v29, %v1107_v29 }
  0xc6   : > { %v1116_v31 = vsub.f32 %v940_v36, %v295_v0  ;;  %v1119_v33 = vsub.f32 %v943_v37, %v296_v16  ;;  %v421_v34 = vsel %vm179_vm0, %v357_v30, 0.0  ;;  %v424_v39 = vsel %vm179_vm0, %v358_v32, 0.0 }
  0xc7   : > { %419 = vadd.xlane.f32.xlu1 %v418_v23  ;;  %422 = vadd.xlane.f32.xlu0 %v421_v34  ;;  %v242_v35 = vpop.xlane.xlu0 %241  ;;  %v245_v38 = vpop.xlane.xlu1 %244 }
  0xc8   : > { %v297_v42 = vmul.f32 0.03125, %v242_v35  ;;  %v298_v20 = vmul.f32 0.03125, %v245_v38  ;;  %v359_v46 = vmul.f32 %v1116_v31, %v1116_v31  ;;  %v360_v36 = vmul.f32 %v1119_v33, %v1119_v33 }
  0xca   : > { %v1128_v47 = vsub.f32 %v950_v40, %v297_v42  ;;  %v1131_v37 = vsub.f32 %v953_v41, %v298_v20  ;;  %v427_v50 = vsel %vm179_vm0, %v359_v46, 0.0  ;;  %v430_v8 = vsel %vm179_vm0, %v360_v36, 0.0 }
  0xcb   : > { %425 = vadd.xlane.f32.xlu1 %v424_v39  ;;  %428 = vadd.xlane.f32.xlu0 %v427_v50  ;;  %v248_v51 = vpop.xlane.xlu0 %247  ;;  %v251_v54 = vpop.xlane.xlu1 %250 }
  0xcc   : > { %v299_v58 = vmul.f32 0.03125, %v248_v51  ;;  %v300_v24 = vmul.f32 0.03125, %v251_v54  ;;  %v361_v62 = vmul.f32 %v1128_v47, %v1128_v47  ;;  %v362_v40 = vmul.f32 %v1131_v37, %v1131_v37 }
  0xce   : > { %v1140_v63 = vsub.f32 %v960_v44, %v299_v58  ;;  %v1143_v41 = vsub.f32 %v963_v45, %v300_v24  ;;  %v433_v3 = vsel %vm179_vm0, %v361_v62, 0.0  ;;  %v436_v12 = vsel %vm179_vm0, %v362_v40, 0.0 }
  0xcf   : > { %431 = vadd.xlane.f32.xlu1 %v430_v8  ;;  %434 = vadd.xlane.f32.xlu0 %v433_v3  ;;  %v254_v4 = vpop.xlane.xlu0 %253  ;;  %v257_v6 = vpop.xlane.xlu1 %256 }
  0xd0   : > { %v301_v14 = vmul.f32 0.03125, %v254_v4  ;;  %v302_v28 = vmul.f32 0.03125, %v257_v6  ;;  %v363_v18 = vmul.f32 %v1140_v63, %v1140_v63  ;;  %v364_v44 = vmul.f32 %v1143_v41, %v1143_v41 }
  0xd2   : > { %v1152_v19 = vsub.f32 %v970_v48, %v301_v14  ;;  %v1155_v45 = vsub.f32 %v973_v49, %v302_v28  ;;  %v439_v22 = vsel %vm179_vm0, %v363_v18, 0.0  ;;  %v442_v16 = vsel %vm179_vm0, %v364_v44, 0.0 }
  0xd3   : > { %437 = vadd.xlane.f32.xlu1 %v436_v12  ;;  %440 = vadd.xlane.f32.xlu0 %v439_v22  ;;  %v260_v23 = vpop.xlane.xlu0 %259  ;;  %v263_v0 = vpop.xlane.xlu1 %262 }
  0xd4   : > { %v303_v30 = vmul.f32 0.03125, %v260_v23  ;;  %v304_v32 = vmul.f32 0.03125, %v263_v0  ;;  %v365_v34 = vmul.f32 %v1152_v19, %v1152_v19  ;;  %v366_v48 = vmul.f32 %v1155_v45, %v1155_v45 }
  0xd6   : > { %v1164_v35 = vsub.f32 %v980_v52, %v303_v30  ;;  %v1167_v49 = vsub.f32 %v983_v53, %v304_v32  ;;  %v445_v38 = vsel %vm179_vm0, %v365_v34, 0.0  ;;  %v448_v20 = vsel %vm179_vm0, %v366_v48, 0.0 }
  0xd7   : > { %443 = vadd.xlane.f32.xlu1 %v442_v16  ;;  %446 = vadd.xlane.f32.xlu0 %v445_v38  ;;  %v266_v39 = vpop.xlane.xlu0 %265  ;;  %v269_v42 = vpop.xlane.xlu1 %268 }
  0xd8   : > { %v305_v46 = vmul.f32 0.03125, %v266_v39  ;;  %v306_v36 = vmul.f32 0.03125, %v269_v42  ;;  %v367_v50 = vmul.f32 %v1164_v35, %v1164_v35  ;;  %v368_v52 = vmul.f32 %v1167_v49, %v1167_v49 }
  0xda   : > { %v1176_v51 = vsub.f32 %v990_v56, %v305_v46  ;;  %v1179_v53 = vsub.f32 %v993_v57, %v306_v36  ;;  %v451_v54 = vsel %vm179_vm0, %v367_v50, 0.0  ;;  %v454_v24 = vsel %vm179_vm0, %v368_v52, 0.0 }
  0xdb   : > { %449 = vadd.xlane.f32.xlu1 %v448_v20  ;;  %452 = vadd.xlane.f32.xlu0 %v451_v54  ;;  %v272_v8 = vpop.xlane.xlu0 %271  ;;  %v275_v58 = vpop.xlane.xlu1 %274 }
  0xdc   : > { %v307_v62 = vmul.f32 0.03125, %v272_v8  ;;  %v308_v40 = vmul.f32 0.03125, %v275_v58  ;;  %v369_v3 = vmul.f32 %v1176_v51, %v1176_v51  ;;  %v370_v56 = vmul.f32 %v1179_v53, %v1179_v53  ;;  %v1204_v58 = vld [vmem:[%s1345_s1] ss:$0 sm:$0xff] }
  0xde   : > { %v1188_v4 = vsub.f32 %v1000_v60, %v307_v62  ;;  %v1191_v57 = vsub.f32 %v1003_v61, %v308_v40  ;;  %v457_v6 = vsel %vm179_vm0, %v369_v3, 0.0  ;;  %v460_v12 = vsel %vm179_vm0, %v370_v56, 0.0 }
  0xdf   : > { %455 = vadd.xlane.f32.xlu1 %v454_v24  ;;  %458 = vadd.xlane.f32.xlu0 %v457_v6 }
  0xe0   : > { %v371_v14 = vmul.f32 %v1188_v4, %v1188_v4  ;;  %v372_v28 = vmul.f32 %v1191_v57, %v1191_v57 }
  0xe2   : > { %v463_v18 = vsel %vm179_vm0, %v371_v14, 0.0  ;;  %v466_v60 = vsel %vm179_vm0, %v372_v28, 0.0 }
  0xe3   : > { %461 = vadd.xlane.f32.xlu1 %v460_v12  ;;  %464 = vadd.xlane.f32.xlu0 %v463_v18 }
  0xe7   : > { %467 = vadd.xlane.f32.xlu1 %v466_v60 }
 0x134   : > { %v375_v61 = vpop.xlane.xlu0 %374 }
 0x135   : > { %v469_v44 = vmul.f32 0.03125, %v375_v61 }
 0x137   : > { %v501_v22 = vadd.f32 1e-06, %v469_v44 }
 0x138   : > { %v378_v23 = vpop.xlane.xlu1 %377  ;;  %v381_v0 = vpop.xlane.xlu0 %380 }
 0x139   : > { %744 = vrsqrt.f32 %v501_v22  ;;  %v470_v16 = vmul.f32 0.03125, %v378_v23  ;;  %v471_v30 = vmul.f32 0.03125, %v381_v0 }
 0x13b   : > { %v502_v32 = vadd.f32 1e-06, %v470_v16  ;;  %v503_v34 = vadd.f32 1e-06, %v471_v30 }
 0x13c   : > { %v384_v48 = vpop.xlane.xlu1 %383  ;;  %v387_v38 = vpop.xlane.xlu0 %386 }
 0x13d   : > { %746 = vrsqrt.f32 %v502_v32  ;;  %v472_v39 = vmul.f32 0.03125, %v384_v48  ;;  %v473_v42 = vmul.f32 0.03125, %v387_v38 }
 0x13e   : > { %748 = vrsqrt.f32 %v503_v34 }
 0x13f   : > { %v504_v20 = vadd.f32 1e-06, %v472_v39  ;;  %v505_v46 = vadd.f32 1e-06, %v473_v42 }
 0x140   : > { %v390_v36 = vpop.xlane.xlu1 %389  ;;  %v393_v50 = vpop.xlane.xlu0 %392 }
 0x141   : > { %750 = vrsqrt.f32 %v504_v20  ;;  %v474_v52 = vmul.f32 0.03125, %v390_v36  ;;  %v475_v54 = vmul.f32 0.03125, %v393_v50 }
 0x142   : > { %752 = vrsqrt.f32 %v505_v46 }
 0x143   : > { %v745_v8 = vpop.eup %744  ;;  %v506_v24 = vadd.f32 1e-06, %v474_v52  ;;  %v507_v62 = vadd.f32 1e-06, %v475_v54 }
 0x144   : > { %v565_v40 = vmul.f32 %v745_v8, %v1010_v10  ;;  %v396_v3 = vpop.xlane.xlu1 %395  ;;  %v399_v56 = vpop.xlane.xlu0 %398 }
 0x145   : > { %754 = vrsqrt.f32 %v506_v24  ;;  %v476_v6 = vmul.f32 0.03125, %v396_v3  ;;  %v477_v12 = vmul.f32 0.03125, %v399_v56 }
 0x146   : > { %v604_v14 = vmul.f32 %v1204_v58, %v565_v40  ;;  %756 = vrsqrt.f32 %v507_v62 }
 0x147   : > { %v747_v28 = vpop.eup %746  ;;  %v508_v18 = vadd.f32 1e-06, %v476_v6  ;;  %v509_v60 = vadd.f32 1e-06, %v477_v12 }
 0x148   : > { %v749_v61 = vpop.eup %748  ;;  %636 = vst.msk [vmem:[%s1212_s20] sm:$0xff] %vm179_vm0, %v604_v14  ;;  %v566_v10 = vmul.f32 %v747_v28, %v1020_v26  ;;  %v402_v44 = vpop.xlane.xlu1 %401 }
 0x149   : > { %v405_v22 = vpop.xlane.xlu0 %404  ;;  %v567_v23 = vmul.f32 %v749_v61, %v1013_v11  ;;  %758 = vrsqrt.f32 %v508_v18  ;;  %v478_v0 = vmul.f32 0.03125, %v402_v44 }
 0x14a   : > { %v479_v16 = vmul.f32 0.03125, %v405_v22  ;;  %v605_v30 = vmul.f32 %v1204_v58, %v566_v10  ;;  %760 = vrsqrt.f32 %v509_v60 }
 0x14b   : > { %v751_v32 = vpop.eup %750  ;;  %v606_v34 = vmul.f32 %v1204_v58, %v567_v23  ;;  %v510_v48 = vadd.f32 1e-06, %v478_v0 }
 0x14c   : > { %v511_v38 = vadd.f32 1e-06, %v479_v16  ;;  %v753_v39 = vpop.eup %752  ;;  %637 = vst.msk [vmem:[%s1212_s20 + $0x8] sm:$0xff] %vm179_vm0, %v605_v30  ;;  %v568_v26 = vmul.f32 %v751_v32, %v1023_v27  ;;  %v408_v42 = vpop.xlane.xlu1 %407 }
 0x14d   : > { %v411_v20 = vpop.xlane.xlu0 %410  ;;  %638 = vst.msk [vmem:[%s1212_s20 + $0x10] sm:$0xff] %vm179_vm0, %v606_v34  ;;  %v569_v11 = vmul.f32 %v753_v39, %v1032_v2  ;;  %762 = vrsqrt.f32 %v510_v48  ;;  %v480_v46 = vmul.f32 0.03125, %v408_v42 }
 0x14e   : > { %v481_v36 = vmul.f32 0.03125, %v411_v20  ;;  %v607_v50 = vmul.f32 %v1204_v58, %v568_v26  ;;  %764 = vrsqrt.f32 %v511_v38 }
 0x14f   : > { %v755_v52 = vpop.eup %754  ;;  %v608_v54 = vmul.f32 %v1204_v58, %v569_v11  ;;  %v512_v8 = vadd.f32 1e-06, %v480_v46 }
 0x150   : > { %v513_v24 = vadd.f32 1e-06, %v481_v36  ;;  %v757_v62 = vpop.eup %756  ;;  %639 = vst.msk [vmem:[%s1212_s20 + $0x18] sm:$0xff] %vm179_vm0, %v607_v50  ;;  %v570_v27 = vmul.f32 %v755_v52, %v1035_v5  ;;  %v414_v40 = vpop.xlane.xlu1 %413 }
 0x151   : > { %v417_v3 = vpop.xlane.xlu0 %416  ;;  %640 = vst.msk [vmem:[%s1212_s20 + $0x20] sm:$0xff] %vm179_vm0, %v608_v54  ;;  %v571_v2 = vmul.f32 %v757_v62, %v1044_v55  ;;  %766 = vrsqrt.f32 %v512_v8  ;;  %v482_v56 = vmul.f32 0.03125, %v414_v40 }
 0x152   : > { %v483_v6 = vmul.f32 0.03125, %v417_v3  ;;  %v609_v12 = vmul.f32 %v1204_v58, %v570_v27  ;;  %768 = vrsqrt.f32 %v513_v24 }
 0x153   : > { %v759_v14 = vpop.eup %758  ;;  %v610_v28 = vmul.f32 %v1204_v58, %v571_v2  ;;  %v514_v18 = vadd.f32 1e-06, %v482_v56 }
 0x154   : > { %v515_v60 = vadd.f32 1e-06, %v483_v6  ;;  %v761_v61 = vpop.eup %760  ;;  %641 = vst.msk [vmem:[%s1212_s20 + $0x28] sm:$0xff] %vm179_vm0, %v609_v12  ;;  %v572_v5 = vmul.f32 %v759_v14, %v1047_v9  ;;  %v420_v10 = vpop.xlane.xlu1 %419 }
 0x155   : > { %v423_v44 = vpop.xlane.xlu0 %422  ;;  %642 = vst.msk [vmem:[%s1212_s20 + $0x30] sm:$0xff] %vm179_vm0, %v610_v28  ;;  %v573_v55 = vmul.f32 %v761_v61, %v1056_v7  ;;  %770 = vrsqrt.f32 %v514_v18  ;;  %v484_v22 = vmul.f32 0.03125, %v420_v10 }
 0x156   : > { %v485_v23 = vmul.f32 0.03125, %v423_v44  ;;  %v611_v0 = vmul.f32 %v1204_v58, %v572_v5  ;;  %772 = vrsqrt.f32 %v515_v60 }
 0x157   : > { %v763_v16 = vpop.eup %762  ;;  %v612_v30 = vmul.f32 %v1204_v58, %v573_v55  ;;  %v516_v32 = vadd.f32 1e-06, %v484_v22 }
 0x158   : > { %v517_v34 = vadd.f32 1e-06, %v485_v23  ;;  %v765_v48 = vpop.eup %764  ;;  %643 = vst.msk [vmem:[%s1212_s20 + $0x38] sm:$0xff] %vm179_vm0, %v611_v0  ;;  %v574_v9 = vmul.f32 %v763_v16, %v1059_v13  ;;  %v426_v38 = vpop.xlane.xlu1 %425 }
 0x159   : > { %v429_v39 = vpop.xlane.xlu0 %428  ;;  %644 = vst.msk [vmem:[%s1212_s20 + $0x40] sm:$0xff] %vm179_vm0, %v612_v30  ;;  %v575_v7 = vmul.f32 %v765_v48, %v1068_v1  ;;  %774 = vrsqrt.f32 %v516_v32  ;;  %v486_v26 = vmul.f32 0.03125, %v426_v38 }
 0x15a   : > { %v487_v42 = vmul.f32 0.03125, %v429_v39  ;;  %v613_v20 = vmul.f32 %v1204_v58, %v574_v9  ;;  %776 = vrsqrt.f32 %v517_v34 }
 0x15b   : > { %v767_v11 = vpop.eup %766  ;;  %v614_v46 = vmul.f32 %v1204_v58, %v575_v7  ;;  %v518_v36 = vadd.f32 1e-06, %v486_v26 }
 0x15c   : > { %v519_v50 = vadd.f32 1e-06, %v487_v42  ;;  %v769_v52 = vpop.eup %768  ;;  %645 = vst.msk [vmem:[%s1212_s20 + $0x48] sm:$0xff] %vm179_vm0, %v613_v20  ;;  %v576_v13 = vmul.f32 %v767_v11, %v1071_v17  ;;  %v432_v54 = vpop.xlane.xlu1 %431 }
 0x15d   : > { %v435_v8 = vpop.xlane.xlu0 %434  ;;  %646 = vst.msk [vmem:[%s1212_s20 + $0x50] sm:$0xff] %vm179_vm0, %v614_v46  ;;  %v577_v1 = vmul.f32 %v769_v52, %v1080_v43  ;;  %778 = vrsqrt.f32 %v518_v36  ;;  %v488_v24 = vmul.f32 0.03125, %v432_v54 }
 0x15e   : > { %v489_v62 = vmul.f32 0.03125, %v435_v8  ;;  %v615_v27 = vmul.f32 %v1204_v58, %v576_v13  ;;  %780 = vrsqrt.f32 %v519_v50 }
 0x15f   : > { %v771_v40 = vpop.eup %770  ;;  %v616_v3 = vmul.f32 %v1204_v58, %v577_v1  ;;  %v520_v2 = vadd.f32 1e-06, %v488_v24 }
 0x160   : > { %v521_v56 = vadd.f32 1e-06, %v489_v62  ;;  %v773_v6 = vpop.eup %772  ;;  %647 = vst.msk [vmem:[%s1212_s20 + $0x58] sm:$0xff] %vm179_vm0, %v615_v27  ;;  %v578_v17 = vmul.f32 %v771_v40, %v1083_v21  ;;  %v438_v12 = vpop.xlane.xlu1 %437 }
 0x161   : > { %v441_v14 = vpop.xlane.xlu0 %440  ;;  %648 = vst.msk [vmem:[%s1212_s20 + $0x60] sm:$0xff] %vm179_vm0, %v616_v3  ;;  %v579_v43 = vmul.f32 %v773_v6, %v1092_v59  ;;  %782 = vrsqrt.f32 %v520_v2  ;;  %v490_v28 = vmul.f32 0.03125, %v438_v12 }
 0x162   : > { %v491_v18 = vmul.f32 0.03125, %v441_v14  ;;  %v617_v60 = vmul.f32 %v1204_v58, %v578_v17  ;;  %784 = vrsqrt.f32 %v521_v56 }
 0x163   : > { %v775_v61 = vpop.eup %774  ;;  %v618_v5 = vmul.f32 %v1204_v58, %v579_v43  ;;  %v522_v10 = vadd.f32 1e-06, %v490_v28 }
 0x164   : > { %v523_v44 = vadd.f32 1e-06, %v491_v18  ;;  %v777_v55 = vpop.eup %776  ;;  %649 = vst.msk [vmem:[%s1212_s20 + $0x68] sm:$0xff] %vm179_vm0, %v617_v60  ;;  %v580_v21 = vmul.f32 %v775_v61, %v1095_v25  ;;  %v444_v22 = vpop.xlane.xlu1 %443 }
 0x165   : > { %v447_v23 = vpop.xlane.xlu0 %446  ;;  %650 = vst.msk [vmem:[%s1212_s20 + $0x70] sm:$0xff] %vm179_vm0, %v618_v5  ;;  %v581_v59 = vmul.f32 %v777_v55, %v1104_v15  ;;  %786 = vrsqrt.f32 %v522_v10  ;;  %v492_v0 = vmul.f32 0.03125, %v444_v22 }
 0x166   : > { %v493_v16 = vmul.f32 0.03125, %v447_v23  ;;  %v619_v30 = vmul.f32 %v1204_v58, %v580_v21  ;;  %788 = vrsqrt.f32 %v523_v44 }
 0x167   : > { %v779_v32 = vpop.eup %778  ;;  %v620_v34 = vmul.f32 %v1204_v58, %v581_v59  ;;  %v524_v48 = vadd.f32 1e-06, %v492_v0 }
 0x168   : > { %v525_v9 = vadd.f32 1e-06, %v493_v16  ;;  %v781_v38 = vpop.eup %780  ;;  %651 = vst.msk [vmem:[%s1212_s20 + $0x78] sm:$0xff] %vm179_vm0, %v619_v30  ;;  %v582_v25 = vmul.f32 %v779_v32, %v1107_v29  ;;  %v450_v39 = vpop.xlane.xlu1 %449 }
 0x169   : > { %v453_v7 = vpop.xlane.xlu0 %452  ;;  %652 = vst.msk [vmem:[%s1212_s20 + $0x80] sm:$0xff] %vm179_vm0, %v620_v34  ;;  %v583_v15 = vmul.f32 %v781_v38, %v1116_v31  ;;  %790 = vrsqrt.f32 %v524_v48  ;;  %v494_v26 = vmul.f32 0.03125, %v450_v39 }
 0x16a   : > { %v495_v42 = vmul.f32 0.03125, %v453_v7  ;;  %v621_v20 = vmul.f32 %v1204_v58, %v582_v25  ;;  %792 = vrsqrt.f32 %v525_v9 }
 0x16b   : > { %v783_v11 = vpop.eup %782  ;;  %v622_v46 = vmul.f32 %v1204_v58, %v583_v15  ;;  %v526_v36 = vadd.f32 1e-06, %v494_v26 }
 0x16c   : > { %v527_v50 = vadd.f32 1e-06, %v495_v42  ;;  %v785_v52 = vpop.eup %784  ;;  %653 = vst.msk [vmem:[%s1212_s20 + $0x88] sm:$0xff] %vm179_vm0, %v621_v20  ;;  %v584_v29 = vmul.f32 %v783_v11, %v1119_v33  ;;  %v456_v13 = vpop.xlane.xlu1 %455 }
 0x16d   : > { %v459_v54 = vpop.xlane.xlu0 %458  ;;  %654 = vst.msk [vmem:[%s1212_s20 + $0x90] sm:$0xff] %vm179_vm0, %v622_v46  ;;  %v585_v31 = vmul.f32 %v785_v52, %v1128_v47  ;;  %794 = vrsqrt.f32 %v526_v36  ;;  %v496_v8 = vmul.f32 0.03125, %v456_v13 }
 0x16e   : > { %v497_v1 = vmul.f32 0.03125, %v459_v54  ;;  %v623_v24 = vmul.f32 %v1204_v58, %v584_v29  ;;  %796 = vrsqrt.f32 %v527_v50 }
 0x16f   : > { %v787_v62 = vpop.eup %786  ;;  %v624_v27 = vmul.f32 %v1204_v58, %v585_v31  ;;  %v528_v40 = vadd.f32 1e-06, %v496_v8 }
 0x170   : > { %v529_v3 = vadd.f32 1e-06, %v497_v1  ;;  %v789_v2 = vpop.eup %788  ;;  %655 = vst.msk [vmem:[%s1212_s20 + $0x98] sm:$0xff] %vm179_vm0, %v623_v24  ;;  %v586_v33 = vmul.f32 %v787_v62, %v1131_v37  ;;  %v462_v56 = vpop.xlane.xlu1 %461 }
 0x171   : > { %v465_v6 = vpop.xlane.xlu0 %464  ;;  %656 = vst.msk [vmem:[%s1212_s20 + $0xa0] sm:$0xff] %vm179_vm0, %v624_v27  ;;  %v587_v47 = vmul.f32 %v789_v2, %v1140_v63  ;;  %798 = vrsqrt.f32 %v528_v40  ;;  %v498_v17 = vmul.f32 0.03125, %v462_v56 }
 0x172   : > { %v499_v12 = vmul.f32 0.03125, %v465_v6  ;;  %v625_v14 = vmul.f32 %v1204_v58, %v586_v33  ;;  %800 = vrsqrt.f32 %v529_v3 }
 0x173   : > { %v791_v43 = vpop.eup %790  ;;  %v626_v28 = vmul.f32 %v1204_v58, %v587_v47  ;;  %v530_v18 = vadd.f32 1e-06, %v498_v17 }
 0x174   : > { %v531_v60 = vadd.f32 1e-06, %v499_v12  ;;  %v793_v37 = vpop.eup %792  ;;  %657 = vst.msk [vmem:[%s1212_s20 + $0xa8] sm:$0xff] %vm179_vm0, %v625_v14  ;;  %v588_v61 = vmul.f32 %v791_v43, %v1143_v41  ;;  %v468_v5 = vpop.xlane.xlu1 %467 }
 0x175   : > { %658 = vst.msk [vmem:[%s1212_s20 + $0xb0] sm:$0xff] %vm179_vm0, %v626_v28  ;;  %v589_v63 = vmul.f32 %v793_v37, %v1152_v19  ;;  %802 = vrsqrt.f32 %v530_v18  ;;  %v500_v10 = vmul.f32 0.03125, %v468_v5 }
 0x176   : > { %v627_v44 = vmul.f32 %v1204_v58, %v588_v61  ;;  %804 = vrsqrt.f32 %v531_v60 }
 0x177   : > { %v795_v55 = vpop.eup %794  ;;  %v628_v21 = vmul.f32 %v1204_v58, %v589_v63  ;;  %v532_v22 = vadd.f32 1e-06, %v500_v10 }
 0x178   : > { %v797_v23 = vpop.eup %796  ;;  %659 = vst.msk [vmem:[%s1212_s20 + $0xb8] sm:$0xff] %vm179_vm0, %v627_v44  ;;  %v590_v41 = vmul.f32 %v795_v55, %v1155_v45 }
 0x179   : > { %660 = vst.msk [vmem:[%s1212_s20 + $0xc0] sm:$0xff] %vm179_vm0, %v628_v21  ;;  %v591_v19 = vmul.f32 %v797_v23, %v1164_v35  ;;  %806 = vrsqrt.f32 %v532_v22 }
 0x17a   : > { %v629_v59 = vmul.f32 %v1204_v58, %v590_v41 }
 0x17b   : > { %v799_v0 = vpop.eup %798  ;;  %v630_v16 = vmul.f32 %v1204_v58, %v591_v19 }
 0x17c   : > { %v801_v30 = vpop.eup %800  ;;  %661 = vst.msk [vmem:[%s1212_s20 + $0xc8] sm:$0xff] %vm179_vm0, %v629_v59  ;;  %v592_v32 = vmul.f32 %v799_v0, %v1167_v49 }
 0x17d   : > { %662 = vst.msk [vmem:[%s1212_s20 + $0xd0] sm:$0xff] %vm179_vm0, %v630_v16  ;;  %v593_v45 = vmul.f32 %v801_v30, %v1176_v51 }
 0x17e   : > { %v631_v35 = vmul.f32 %v1204_v58, %v592_v32 }
 0x17f   : > { %v803_v34 = vpop.eup %802  ;;  %v632_v48 = vmul.f32 %v1204_v58, %v593_v45 }
 0x180   : > { %v805_v9 = vpop.eup %804  ;;  %663 = vst.msk [vmem:[%s1212_s20 + $0xd8] sm:$0xff] %vm179_vm0, %v631_v35  ;;  %v594_v38 = vmul.f32 %v803_v34, %v1179_v53 }
 0x181   : > { %664 = vst.msk [vmem:[%s1212_s20 + $0xe0] sm:$0xff] %vm179_vm0, %v632_v48  ;;  %v595_v49 = vmul.f32 %v805_v9, %v1188_v4 }
 0x182   : > { %v633_v25 = vmul.f32 %v1204_v58, %v594_v38 }
 0x183   : > { %v807_v39 = vpop.eup %806  ;;  %v634_v51 = vmul.f32 %v1204_v58, %v595_v49 }
 0x184   : > { %665 = vst.msk [vmem:[%s1212_s20 + $0xe8] sm:$0xff] %vm179_vm0, %v633_v25  ;;  %v596_v7 = vmul.f32 %v807_v39, %v1191_v57 }
 0x185   : > { %666 = vst.msk [vmem:[%s1212_s20 + $0xf0] sm:$0xff] %vm179_vm0, %v634_v51 }
 0x186   : > { %v635_v15 = vmul.f32 %v1204_v58, %v596_v7 }
 0x188   : > { %667 = vst.msk [vmem:[%s1212_s20 + $0xf8] sm:$0xff] %vm179_vm0, %v635_v15 }
 0x189 PF: > { %s12_s9 = sadd.s32 1, %s814_s9  }
 0x18a   : > { %p9_p4 = scmp.ge.s32.totalorder %s12_s9, 4  }
 0x18c   :  { %11 = sbr.rel (!%p9_p4) target bundleno = 1 (0x1), region = 58 }

</bundles_post_ra>
